<compile_context>
chip_gen: v7x
topology: tpu7x:2x2x1
jax: 0.10.0
libtpu: 0.0.40
codegen_flags: <defaults>
</compile_context>

<pallas_src>
import jax
import jax.numpy as jnp
from jax.experimental import pallas as pl
from jax.experimental.pallas import tpu as pltpu


def _truncate_kernel(x_ref, o_ref):
    # Read only the first out_L columns of the input block and emit one
    # full-width, lane-dense store of the whole output block.
    o_ref[...] = x_ref[:, : o_ref.shape[-1]]


def _row_tile(num_rows: int, in_len: int, out_len: int, itemsize: int) -> int:
    """Largest sublane-pack-aligned row tile fitting a v7x-safe VMEM budget."""
    pack = max(8, 32 // max(1, itemsize))          # 8 f32/i32, 16 bf16, 32 i8
    vmem_budget = 24 * 1024 * 1024                 # ~24 MiB (v7x-safe)
    bytes_per_row = 2 * (in_len + out_len) * itemsize   # double-buffered in+out
    tb = max(1, vmem_budget // max(1, bytes_per_row))
    tb = min(tb, 2048)
    if tb >= num_rows:
        return num_rows                            # block == full array dim
    return max(pack, (tb // pack) * pack)


def make_truncate(max_seq_len: int):
    """Returns forward(x) matching torch Truncate semantics on arrays."""

    def forward(x: jnp.ndarray) -> jnp.ndarray:
        L = x.shape[-1]
        if L <= max_seq_len:
            # Slicing past the end is identity — match torch list[:k] behavior.
            return x

        orig_shape = x.shape
        out_L = max_seq_len
        # Collapse leading dims; handle 1-D (single sequence) as one row.
        x2 = x.reshape(-1, L) if x.ndim > 1 else x.reshape(1, L)
        B = x2.shape[0]

        TB = _row_tile(B, L, out_L, jnp.dtype(x.dtype).itemsize)
        grid = (pl.cdiv(B, TB),)

        out = pl.pallas_call(
            _truncate_kernel,
            out_shape=jax.ShapeDtypeStruct((B, out_L), x.dtype),
            grid=grid,
            in_specs=[pl.BlockSpec((TB, L), lambda i: (i, 0))],
            out_specs=pl.BlockSpec((TB, out_L), lambda i: (i, 0)),
            compiler_params=pltpu.CompilerParams(
                dimension_semantics=("parallel",)),
        )(x2)

        new_shape = orig_shape[:-1] + (out_L,)
        return out.reshape(new_shape)

    return forward


if __name__ == "__main__":
    key = jax.random.PRNGKey(0)
    batch, seq = 2, 16
    max_seq_len = 8

    truncate = make_truncate(max_seq_len)

    # Batched token ids (the typical Truncate input: List[List[int]]).
    ids = jax.random.randint(key, (batch, seq), 0, 1000, dtype=jnp.int32)
    y = jax.block_until_ready(truncate(ids))
    assert y.shape == (batch, max_seq_len), y.shape
    assert y.dtype == ids.dtype
    assert jnp.array_equal(y, ids[:, :max_seq_len]), "int truncation mismatch"

    # Float sequences (e.g. per-token scores).
    xf = jax.random.normal(key, (batch, seq), dtype=jnp.float32)
    yf = jax.block_until_ready(truncate(xf))
    assert jnp.allclose(yf, xf[:, :max_seq_len]), "float truncation mismatch"

    # Single sequence (List[int]) -> 1-D array.
    ids1 = jax.random.randint(key, (seq,), 0, 1000, dtype=jnp.int32)
    y1 = jax.block_until_ready(truncate(ids1))
    assert y1.shape == (max_seq_len,)
    assert jnp.array_equal(y1, ids1[:max_seq_len]), "1-D truncation mismatch"

    # Already-short sequence: identity (no truncation).
    short = jax.random.randint(key, (batch, max_seq_len - 3), 0, 1000,
                               dtype=jnp.int32)
    ys = jax.block_until_ready(truncate(short))
    assert jnp.array_equal(ys, short), "no-op path mismatch"

    # TODO(synk): List[str] / List[List[str]] inputs have no array equivalent;
    # only numeric token sequences are handled here.
    print("KERNEL_OK")
</pallas_src>

<mosaic_0001>
module attributes {stable_mosaic.version = 11 : i64} {
  func.func @_truncate_kernel(%arg0: i32, %arg1: memref<2x16xi32, #tpu.memory_space<vmem>>, %arg2: memref<2x8xi32, #tpu.memory_space<vmem>>) attributes {dimension_semantics = [#tpu.dimension_semantics<parallel>], iteration_bounds = array<i64: 1>, scalar_prefetch = 0 : i64, scratch_operands = 0 : i64, tpu.core_type = #tpu.core_type<tc>, window_params = [{transform_indices = @transform_0, window_bounds = array<i64: 2, 16>}, {transform_indices = @transform_1, window_bounds = array<i64: 2, 8>}]} {
    %c0 = arith.constant 0 : index
    %c0_0 = arith.constant 0 : index
    %0 = vector.load %arg1[%c0, %c0_0] : memref<2x16xi32, #tpu.memory_space<vmem>>, vector<2x8xi32>
    %c0_1 = arith.constant 0 : index
    %c0_2 = arith.constant 0 : index
    %1 = vector.load %arg2[%c0_1, %c0_2] : memref<2x8xi32, #tpu.memory_space<vmem>>, vector<2x8xi32>
    tpu.vector_store %arg2[%c0_1, %c0_2], %0 {strides = array<i32>} : memref<2x8xi32, #tpu.memory_space<vmem>>, vector<2x8xi32>,
    return
  }
  func.func @transform_0(%arg0: i32) -> (i32, i32) {
    %c0_i32 = arith.constant 0 : i32
    %c0_i32_0 = arith.constant 0 : i32
    return %arg0, %c0_i32 : i32, i32
  }
  func.func @transform_1(%arg0: i32) -> (i32, i32) {
    %c0_i32 = arith.constant 0 : i32
    %c0_i32_0 = arith.constant 0 : i32
    return %arg0, %c0_i32 : i32, i32
  }
}

</mosaic_0001>

<bundles_post_ra>
// kernel: tpu_custom_call.1
= control target key start
LH: loop header
LB: loop body
LE: loop exit
PB: predicated region body
PF: predicated region fallthrough
CT: control target
= control target key end

     0   :  { %6 = vsyncpa [#allocation3], 0  ;;  %s125_s0 = inlined_call_operand.hbm [shape: s32[2,16], index: 0, kind: input, shape index: {}]   ;;  %s126_s1 = inlined_call_operand.hbm [shape: s32[2,8], index: 1, kind: output, shape index: {}]  }
   0x1   :  { %7 = vsyncpa [#allocation4], 0  ;;  %s89_s6 = smov [#allocation2]   ;;  %s41_s10 = scalar_lea.hbm %s125_s0, 32 }
   0x2   :  { %s14_s7 = sshll.u32 %s89_s6, 4  ;;  %p42_p0 = scmp.ne.s32.totalorder %s125_s0, %s41_s10  ;;  %s15_s7 = int_to_ptr.vmem [resolvable:$true] %s14_s7 }
   0x3   :  { %p45_p1 = scmp.lt.u32.totalorder %s41_s10, %s125_s0 }
   0x5   :  { %p47_p2 = pnand %p45_p1, %p42_p0 }
   0x7   :  { %50 = shalt.err (!%p47_p2)
}
   0x8   :  { %s51_s15 = scalar_lea.vmem %s15_s7, 32  ;;  %p56_p4 = scmp.lt.s32.totalorder %s15_s7, %s15_s7 }
   0x9   :  { %p52_p3 = scmp.ne.s32.totalorder %s15_s7, %s51_s15  ;;  %p57_p5 = scmp.lt.s32.totalorder %s51_s15, %s51_s15 }
   0xb   :  { %p58_p6 = por %p57_p5, %p56_p4 }
   0xd   :  { %p59_p7 = pnand %p58_p6, %p52_p3 }
   0xf   :  { %62 = shalt.err (!%p59_p7)
}
  0x10   :  { %17 = dma.hbm_to_vmem [thread:$0]  %s125_s0, 32, %s15_s7, [#allocation3]  }
  0x11   :  { %85 = dma.done.wait [#allocation3], 32  }
  0x12   :  { %86 = vsyncadd [#allocation3], 4294967264  ;;  %s90_s18 = smov [#allocation5]   ;;  %vm22_vm0 = vcmask 58368   ;;  %v21_v0 = vld [vmem:[#allocation2] sm:$0x3] }
  0x13   :  { %s30_s19 = sshll.u32 %s90_s18, 4  ;;  %23 = vst.msk [vmem:[#allocation5] sm:$0x3] %vm22_vm0, %v21_v0  ;;  %s31_s19 = int_to_ptr.vmem [resolvable:$true] %s30_s19 }
  0x14   :  { %s63_s20 = scalar_lea.vmem %s31_s19, 32  ;;  %p68_p9 = scmp.lt.s32.totalorder %s31_s19, %s31_s19 }
  0x15   :  { %p64_p8 = scmp.ne.s32.totalorder %s31_s19, %s63_s20  ;;  %p69_p10 = scmp.lt.s32.totalorder %s63_s20, %s63_s20 }
  0x17   :  { %p70_p11 = por %p69_p10, %p68_p9 }
  0x19   :  { %p71_p12 = pnand %p70_p11, %p64_p8 }
  0x1b   :  { %74 = shalt.err (!%p71_p12)
}
  0x1c   :  { %s75_s23 = scalar_lea.hbm %s126_s1, 32 }
  0x1d   :  { %p76_p13 = scmp.ne.s32.totalorder %s126_s1, %s75_s23  ;;  %p79_p0 = scmp.lt.u32.totalorder %s75_s23, %s126_s1 }
  0x1f   :  { %p81_p1 = pnand %p79_p0, %p76_p13 }
  0x21   :  { %84 = shalt.err (!%p81_p1)
}
  0x22   :  { %33 = dma.vmem_to_hbm [thread:$0]  %s31_s19, 32, %s126_s1, [#allocation4]  }
  0x23   :  { %87 = dma.done.wait [#allocation4], 32  }
  0x24   :  { %88 = vsyncadd [#allocation4], 4294967264 }
  0x25   :  { %37 = vsyncpa [#allocation3], 1 }
  0x26   :  { %38 = vsyncpa [#allocation4], 1 }

</bundles_post_ra>
